<compile_context>
chip_gen: v7x
topology: tpu7x:2x2x1
jax: 0.10.0
libtpu: 0.0.40
codegen_flags: <defaults>
</compile_context>

<pallas_src>
import jax
import jax.numpy as jnp
import numpy as np
from jax.experimental import pallas as pl
from jax.experimental.pallas import tpu as pltpu


# ----------------------------------------------------------------------------
# Kernel
# ----------------------------------------------------------------------------
def linear_regression_kernel(x_ref, w_ref, b_ref, o_ref):
    """out[b, 0] = sum_f x[b, f] * w[0, f] + bias  (VPU multiply + row reduce)."""
    x = x_ref[...]                                     # (B, F) f32
    w = w_ref[...]                                     # (1, F) f32, broadcasts over B
    acc = jnp.sum(x * w, axis=-1, keepdims=True)       # (B, 1)
    o_ref[...] = acc + b_ref[...]                      # bias (1, 1) broadcasts over B


# ----------------------------------------------------------------------------
# Wrapper
# ----------------------------------------------------------------------------
def sequence_regression_linear_forward(x, w, b):
    """Forward of SequenceRegressionLinear.

    x : (B, sequence_length, alphabet_size) float32  (any trailing layout —
        it is flattened exactly like x.view(x.size(0), -1))
    w : (1, input_size) float32   -- nn.Linear weight
    b : (1, 1) float32            -- nn.Linear bias

    Returns (output, None) with output shape (B, 1), matching the module.
    """
    B = x.shape[0]
    x_flat = x.reshape(B, -1).astype(jnp.float32)      # x.view(x.size(0), -1)
    F = x_flat.shape[1]
    assert w.shape == (1, F)

    out = pl.pallas_call(
        linear_regression_kernel,
        out_shape=jax.ShapeDtypeStruct((B, 1), jnp.float32),
        # Single invocation (empty grid): whole arrays resident in VMEM,
        # DMA'd exactly once, no per-step pipeline overhead.
        in_specs=[
            pl.BlockSpec(memory_space=pltpu.MemorySpace.VMEM),  # x_flat (B, F)
            pl.BlockSpec(memory_space=pltpu.MemorySpace.VMEM),  # w      (1, F)
            pl.BlockSpec(memory_space=pltpu.MemorySpace.VMEM),  # b      (1, 1)
        ],
        out_specs=pl.BlockSpec(memory_space=pltpu.MemorySpace.VMEM),
    )(x_flat, w, b)
    return out, None


# ----------------------------------------------------------------------------
# Pure-JAX reference (mirrors PyTorch eval-mode semantics exactly)
# ----------------------------------------------------------------------------
def reference_forward(x, w, b):
    B = x.shape[0]
    x_flat = x.reshape(B, -1)
    return x_flat @ w.T + b, None


# ----------------------------------------------------------------------------
# Main
# ----------------------------------------------------------------------------
if __name__ == "__main__":
    # Shapes consistent with the module defaults:
    #   alphabet_size (input_dim) = 5, sequence_length = 10, input_size = 50.
    batch, alphabet_size, sequence_length = 2, 5, 10
    input_size = alphabet_size * sequence_length

    key = jax.random.PRNGKey(0)
    kx, kw, kb = jax.random.split(key, 3)

    # Input sequences (e.g. one-hot-ish / real-valued features), flattened by
    # the forward exactly like x.view(x.size(0), -1).
    x = jax.random.normal(kx, (batch, sequence_length, alphabet_size),
                          dtype=jnp.float32)

    # nn.Linear(input_size, 1) parameters (same init range as PyTorch default).
    bound = 1.0 / np.sqrt(input_size)
    w = jax.random.uniform(kw, (1, input_size), minval=-bound, maxval=bound,
                           dtype=jnp.float32)
    b = jax.random.uniform(kb, (1, 1), minval=-bound, maxval=bound,
                           dtype=jnp.float32)

    output, second = sequence_regression_linear_forward(x, w, b)
    output = jax.block_until_ready(output)

    ref_out, _ = reference_forward(x, w, b)
    np.testing.assert_allclose(np.asarray(output), np.asarray(ref_out),
                               rtol=1e-5, atol=1e-5)

    assert output.shape == (batch, 1)
    assert second is None
    print("KERNEL_OK")
</pallas_src>

<mosaic_0001>
module attributes {stable_mosaic.version = 11 : i64} {
  func.func @linear_regression_kernel(%arg0: memref<2x50xf32, #tpu.memory_space<vmem>>, %arg1: memref<1x50xf32, #tpu.memory_space<vmem>>, %arg2: memref<1x1xf32, #tpu.memory_space<vmem>>, %arg3: memref<2x1xf32, #tpu.memory_space<vmem>>) attributes {dimension_semantics = [], scalar_prefetch = 0 : i64, scratch_operands = 0 : i64, tpu.core_type = #tpu.core_type<tc>} {
    %c0 = arith.constant 0 : index
    %c0_0 = arith.constant 0 : index
    %0 = vector.load %arg0[%c0, %c0_0] : memref<2x50xf32, #tpu.memory_space<vmem>>, vector<2x50xf32>
    %c0_1 = arith.constant 0 : index
    %c0_2 = arith.constant 0 : index
    %1 = vector.load %arg1[%c0_1, %c0_2] : memref<1x50xf32, #tpu.memory_space<vmem>>, vector<1x50xf32>
    %2 = vector.broadcast %1 : vector<1x50xf32> to vector<2x50xf32>
    %3 = arith.mulf %0, %2 : vector<2x50xf32>
    %cst = arith.constant dense<0.000000e+00> : vector<2xf32>
    %4 = vector.multi_reduction <add>, %3, %cst [1] : vector<2x50xf32> to vector<2xf32>
    %5 = vector.shape_cast %4 : vector<2xf32> to vector<2x1xf32>
    %c0_3 = arith.constant 0 : index
    %c0_4 = arith.constant 0 : index
    %6 = vector.load %arg2[%c0_3, %c0_4] : memref<1x1xf32, #tpu.memory_space<vmem>>, vector<1x1xf32>
    %7 = vector.broadcast %6 : vector<1x1xf32> to vector<2x1xf32>
    %8 = arith.addf %5, %7 : vector<2x1xf32>
    %c0_5 = arith.constant 0 : index
    %c0_6 = arith.constant 0 : index
    %9 = vector.load %arg3[%c0_5, %c0_6] : memref<2x1xf32, #tpu.memory_space<vmem>>, vector<2x1xf32>
    tpu.vector_store %arg3[%c0_5, %c0_6], %8 {strides = array<i32>} : memref<2x1xf32, #tpu.memory_space<vmem>>, vector<2x1xf32>,
    return
  }
}

</mosaic_0001>

<bundles_post_ra>
// kernel: tpu_custom_call.1
= control target key start
LH: loop header
LB: loop body
LE: loop exit
PB: predicated region body
PF: predicated region fallthrough
CT: control target
= control target key end

     0   :  { %vm25_vm0 = vcmask 402432   ;;  %vm37_vm1 = vcmask 1024   ;;  %s77_s0 = inlined_call_operand.vmem [shape: f32[2,50], index: 0, kind: input, shape index: {}]   ;;  %s78_s1 = inlined_call_operand.vmem [shape: f32[1,50], index: 1, kind: input, shape index: {}]   ;;  %s79_s2 = inlined_call_operand.<no memory space> [shape: f32[1,1], index: 2, kind: input, shape index: {}]   ;;  %s80_s3 = inlined_call_operand.vmem [shape: f32[2,1], index: 3, kind: output, shape index: {}]  }
   0x1   :  { %v16_v0 = vld [vmem:[%s77_s0] sm:$0x3]  ;;  %v8_v2 = vstv %s79_s2 }
   0x2   :  { %v43_v1 = vld [vmem:[%s78_s1] ss:$0 sm:$0xff]  ;;  %9 = vst [vmem:[#allocation2] sm:$0x1] %v8_v2 }
   0x3   :  { %v24_v3 = vmul.f32 %v43_v1, %v16_v0 }
   0x5   :  { %v26_v4 = vsel %vm25_vm0, %v24_v3, 0.0 }
   0x6   :  { %27 = vadd.xlane.f32.xlu0 %v26_v4 }
   0x9   :  { %v44_v5 = vld [vmem:[#allocation2] ss:$0 sm:$0xff] }
  0x93   :  { %v28_v6 = vpop.xlane.xlu0 %27 }
  0x94   :  { %v36_v7 = vadd.f32 %v44_v5, %v28_v6 }
  0x96   :  { %38 = vst.msk [vmem:[%s80_s3] sm:$0x3] %vm37_vm1, %v36_v7 }

</bundles_post_ra>
